<compile_context>
chip_gen: v6e
topology: v6e:2x2x1
jax: 0.10.0
libtpu: 0.0.40
codegen_flags: <defaults>
</compile_context>

<pallas_src>
import functools

import jax
import jax.numpy as jnp
from jax.experimental import pallas as pl
from jax.experimental.pallas import tpu as pltpu


def _mha_kernel(q_ref, k_ref, v_ref, wq_ref, wk_ref, wv_ref, wd_ref, bd_ref,
                o_ref, *, num_heads):
    bb, S, d_input = q_ref.shape
    d_model = wq_ref.shape[-1]
    depth = d_model // num_heads

    # ---- Full-width Q/K/V projections: one lane-dense MXU pass each. ----
    # (bb, S, X) -> (bb*S, X) merges major dims only: free, no relayout.
    q2 = q_ref[...].reshape(bb * S, d_input)
    k2 = k_ref[...].reshape(bb * S, d_input)
    v2 = v_ref[...].reshape(bb * S, d_input)

    # 1/sqrt(depth) is already folded into Wq on the host.
    qp = jnp.dot(q2, wq_ref[...], preferred_element_type=jnp.float32)
    kp = jnp.dot(k2, wk_ref[...], preferred_element_type=jnp.float32)
    vp = jnp.dot(v2, wv_ref[...], preferred_element_type=jnp.float32)

    qp = qp.reshape(bb, S, d_model).astype(jnp.bfloat16)
    kp = kp.reshape(bb, S, d_model).astype(jnp.bfloat16)
    vp = vp.reshape(bb, S, d_model).astype(jnp.bfloat16)

    # ---- Per-head attention: statically-unrolled loop, static lane slices. ----
    # TODO(synk): replace with KV-tiled online softmax (flash) for large S so
    # VMEM stays O(S * depth) instead of O(S^2).
    ctx_heads = []
    for h in range(num_heads):
        lo, hi = h * depth, (h + 1) * depth
        qh = qp[:, :, lo:hi]
        kh = kp[:, :, lo:hi]
        vh = vp[:, :, lo:hi]

        # Contract the depth axis of Q and K directly (no explicit K^T).
        logits = jnp.einsum("bqd,bkd->bqk", qh, kh,
                            preferred_element_type=jnp.float32)      # (bb, S, S) f32

        # Numerically-stable softmax in f32; approx reciprocal -> EUP slot.
        m = jnp.max(logits, axis=-1, keepdims=True)
        e = jnp.exp(logits - m)
        p = e * pl.reciprocal(jnp.sum(e, axis=-1, keepdims=True), approx=True)

        ctx_heads.append(
            jnp.einsum("bqk,bkd->bqd", p.astype(jnp.bfloat16), vh,
                       preferred_element_type=jnp.float32).astype(jnp.bfloat16))

    # ---- Head concat fused straight into a single full-K output projection. ----
    concat = jnp.concatenate(ctx_heads, axis=-1).reshape(bb * S, d_model)
    out = jnp.dot(concat, wd_ref[...], preferred_element_type=jnp.float32)
    out = out + bd_ref[...]                                           # bias added once
    o_ref[...] = out.reshape(bb, S, d_model).astype(o_ref.dtype)


def _vmem_budget_bytes():
    """Per-generation VMEM limit: 3/4 of physical, conservatively capped."""
    phys = None
    try:
        info = pltpu.get_tpu_info()
        phys = getattr(info, "vmem_capacity_bytes", None)
    except Exception:
        phys = None
    if not phys:
        phys = 64 * 1024 * 1024                      # v7x-safe fallback
    return int(min(phys * 3 // 4, 100 * 1024 * 1024))


def _step_vmem_bytes(bb, S, d_input, d_model, num_heads):
    """Conservative per-grid-step working-set estimate (bytes)."""
    io = 2 * (3 * bb * S * d_input * 2)              # double-buffered bf16 q/k/v blocks
    io += 2 * (bb * S * d_model * 4)                 # double-buffered f32 output block
    w = (3 * d_input * d_model + d_model * d_model) * 2 + d_model * 4
    proj = 3 * bb * S * d_model * (2 + 4)            # bf16 projections + f32 temps
    attn = 4 * bb * S * S * 4                        # logits/exp/probs (+ slack)
    ctx = bb * S * d_model * (2 + 4)                 # bf16 concat + f32 dense out
    return io + w + proj + attn + ctx


def _pick_block_b(B, S, d_input, d_model, num_heads, budget):
    divs = [d for d in range(1, B + 1) if B % d == 0]
    fits = [d for d in divs
            if _step_vmem_bytes(d, S, d_input, d_model, num_heads) <= 0.8 * budget]
    if not fits:
        return 1
    # Prefer >= 2 batch blocks so both v7x TensorCores get a "parallel" slice.
    pref = [d for d in fits if B // d >= 2] if B >= 2 else fits
    return max(pref) if pref else max(fits)


def multi_head_attention(q, k, v, params, *, num_heads, block_b=None):
    """q, k, v: (B, S, d_input) float32. params: weights stored transposed (x @ W)."""
    B, S, d_input = q.shape
    d_model = params["wq"].shape[1]
    assert d_model % num_heads == 0
    depth = d_model // num_heads

    budget = _vmem_budget_bytes()
    if block_b is None:
        block_b = _pick_block_b(B, S, d_input, d_model, num_heads, budget)
    assert B % block_b == 0

    scale = 1.0 / float(depth) ** 0.5

    # Host-side, one-time layout plumbing: bf16 inputs + bf16 resident weights.
    q_bf = q.astype(jnp.bfloat16)
    k_bf = k.astype(jnp.bfloat16)
    v_bf = v.astype(jnp.bfloat16)
    wq = (params["wq"] * scale).astype(jnp.bfloat16)     # (d_input, d_model), scale folded
    wk = params["wk"].astype(jnp.bfloat16)
    wv = params["wv"].astype(jnp.bfloat16)
    wd = params["wd"].astype(jnp.bfloat16)               # (d_model, d_model)
    bd = params["bd"].astype(jnp.float32).reshape(1, d_model)

    grid = (B // block_b,)
    kernel = functools.partial(_mha_kernel, num_heads=num_heads)

    return pl.pallas_call(
        kernel,
        out_shape=jax.ShapeDtypeStruct((B, S, d_model), jnp.float32),
        grid_spec=pltpu.PrefetchScalarGridSpec(
            num_scalar_prefetch=0,
            grid=grid,
            in_specs=[
                pl.BlockSpec((block_b, S, d_input), lambda b: (b, 0, 0)),   # q
                pl.BlockSpec((block_b, S, d_input), lambda b: (b, 0, 0)),   # k
                pl.BlockSpec((block_b, S, d_input), lambda b: (b, 0, 0)),   # v
                pl.BlockSpec((d_input, d_model), lambda b: (0, 0)),         # Wq (resident)
                pl.BlockSpec((d_input, d_model), lambda b: (0, 0)),         # Wk (resident)
                pl.BlockSpec((d_input, d_model), lambda b: (0, 0)),         # Wv (resident)
                pl.BlockSpec((d_model, d_model), lambda b: (0, 0)),         # Wdense (resident)
                pl.BlockSpec((1, d_model), lambda b: (0, 0)),               # bias (resident)
            ],
            out_specs=pl.BlockSpec((block_b, S, d_model), lambda b: (b, 0, 0)),
        ),
        compiler_params=pltpu.CompilerParams(
            dimension_semantics=("parallel",),
            vmem_limit_bytes=budget,
        ),
    )(q_bf, k_bf, v_bf, wq, wk, wv, wd, bd)


def reference_mha(q, k, v, params, *, num_heads):
    """Pure-JAX f32 reference mirroring the PyTorch forward."""
    B, S, _ = q.shape
    d_model = params["wq"].shape[1]
    depth = d_model // num_heads

    def split_heads(x):
        return x.reshape(B, S, num_heads, depth).transpose(0, 2, 1, 3)

    Q = split_heads(q @ params["wq"])
    K = split_heads(k @ params["wk"])
    V = split_heads(v @ params["wv"])
    logits = jnp.einsum("bhqd,bhkd->bhqk", Q, K) / jnp.sqrt(jnp.float32(depth))
    attn = jax.nn.softmax(logits, axis=-1)
    out = jnp.einsum("bhqk,bhkd->bhqd", attn, V)
    concat = out.transpose(0, 2, 1, 3).reshape(B, S, d_model)
    return concat @ params["wd"] + params["bd"]


if __name__ == "__main__":
    # Small, module-consistent shapes.
    B, S = 2, 8
    d_input = 32
    d_model = 32
    num_heads = 4

    key = jax.random.PRNGKey(0)
    kq, kk, kv, k1, k2, k3, k4, k5 = jax.random.split(key, 8)

    q = jax.random.normal(kq, (B, S, d_input), dtype=jnp.float32)
    k = jax.random.normal(kk, (B, S, d_input), dtype=jnp.float32)
    v = jax.random.normal(kv, (B, S, d_input), dtype=jnp.float32)

    # Deterministic parameter init (nn.Linear-like; stored transposed so kernel
    # and reference both compute x @ W).
    scale_in = 1.0 / jnp.sqrt(jnp.float32(d_input))
    scale_dm = 1.0 / jnp.sqrt(jnp.float32(d_model))
    params = {
        "wq": jax.random.uniform(k1, (d_input, d_model), jnp.float32, -scale_in, scale_in),
        "wk": jax.random.uniform(k2, (d_input, d_model), jnp.float32, -scale_in, scale_in),
        "wv": jax.random.uniform(k3, (d_input, d_model), jnp.float32, -scale_in, scale_in),
        "wd": jax.random.uniform(k4, (d_model, d_model), jnp.float32, -scale_dm, scale_dm),
        "bd": jax.random.uniform(k5, (1, d_model), jnp.float32, -scale_dm, scale_dm),
    }

    out = multi_head_attention(q, k, v, params, num_heads=num_heads)
    out = jax.block_until_ready(out)

    ref = reference_mha(q, k, v, params, num_heads=num_heads)
    assert out.shape == (B, S, d_model)
    # bf16 MXU operands + approx reciprocal -> loosened tolerance vs f32 reference.
    assert jnp.allclose(out, ref, atol=2e-2, rtol=2e-2), (
        "mismatch vs reference, max abs err = %g" % float(jnp.max(jnp.abs(out - ref))))

    print("KERNEL_OK")
</pallas_src>

<mosaic_0001>
module attributes {stable_mosaic.version = 11 : i64} {
  func.func @_mha_kernel(%arg0: i32, %arg1: memref<1x8x32xbf16, #tpu.memory_space<vmem>>, %arg2: memref<1x8x32xbf16, #tpu.memory_space<vmem>>, %arg3: memref<1x8x32xbf16, #tpu.memory_space<vmem>>, %arg4: memref<32x32xbf16, #tpu.memory_space<vmem>>, %arg5: memref<32x32xbf16, #tpu.memory_space<vmem>>, %arg6: memref<32x32xbf16, #tpu.memory_space<vmem>>, %arg7: memref<32x32xbf16, #tpu.memory_space<vmem>>, %arg8: memref<1x32xf32, #tpu.memory_space<vmem>>, %arg9: memref<1x8x32xf32, #tpu.memory_space<vmem>>) attributes {dimension_semantics = [#tpu.dimension_semantics<parallel>], iteration_bounds = array<i64: 2>, scalar_prefetch = 0 : i64, scratch_operands = 0 : i64, tpu.core_type = #tpu.core_type<tc>, window_params = [{transform_indices = @transform_0, window_bounds = array<i64: 1, 8, 32>}, {transform_indices = @transform_1, window_bounds = array<i64: 1, 8, 32>}, {transform_indices = @transform_2, window_bounds = array<i64: 1, 8, 32>}, {pipeline_mode = #tpu.pipeline_mode<synchronous>, transform_indices = @transform_3, window_bounds = array<i64: 32, 32>}, {pipeline_mode = #tpu.pipeline_mode<synchronous>, transform_indices = @transform_4, window_bounds = array<i64: 32, 32>}, {pipeline_mode = #tpu.pipeline_mode<synchronous>, transform_indices = @transform_5, window_bounds = array<i64: 32, 32>}, {pipeline_mode = #tpu.pipeline_mode<synchronous>, transform_indices = @transform_6, window_bounds = array<i64: 32, 32>}, {pipeline_mode = #tpu.pipeline_mode<synchronous>, transform_indices = @transform_7, window_bounds = array<i64: 1, 32>}, {transform_indices = @transform_8, window_bounds = array<i64: 1, 8, 32>}]} {
    %c0 = arith.constant 0 : index
    %c0_0 = arith.constant 0 : index
    %c0_1 = arith.constant 0 : index
    %0 = vector.load %arg1[%c0, %c0_0, %c0_1] : memref<1x8x32xbf16, #tpu.memory_space<vmem>>, vector<1x8x32xbf16>
    %1 = vector.shape_cast %0 : vector<1x8x32xbf16> to vector<8x32xbf16>
    %c0_2 = arith.constant 0 : index
    %c0_3 = arith.constant 0 : index
    %c0_4 = arith.constant 0 : index
    %2 = vector.load %arg2[%c0_2, %c0_3, %c0_4] : memref<1x8x32xbf16, #tpu.memory_space<vmem>>, vector<1x8x32xbf16>
    %3 = vector.shape_cast %2 : vector<1x8x32xbf16> to vector<8x32xbf16>
    %c0_5 = arith.constant 0 : index
    %c0_6 = arith.constant 0 : index
    %c0_7 = arith.constant 0 : index
    %4 = vector.load %arg3[%c0_5, %c0_6, %c0_7] : memref<1x8x32xbf16, #tpu.memory_space<vmem>>, vector<1x8x32xbf16>
    %5 = vector.shape_cast %4 : vector<1x8x32xbf16> to vector<8x32xbf16>
    %c0_8 = arith.constant 0 : index
    %c0_9 = arith.constant 0 : index
    %6 = vector.load %arg4[%c0_8, %c0_9] : memref<32x32xbf16, #tpu.memory_space<vmem>>, vector<32x32xbf16>
    %cst = arith.constant dense<0.000000e+00> : vector<8x32xf32>
    %7 = tpu.matmul %1, %6, %cst {dimension_numbers = #tpu.dot_dimension_numbers<[1], [0], [0], [1], [0, 0, 1, 1], [], []>} : vector<8x32xbf16>, vector<32x32xbf16>, vector<8x32xf32> -> vector<8x32xf32>
    %c0_10 = arith.constant 0 : index
    %c0_11 = arith.constant 0 : index
    %8 = vector.load %arg5[%c0_10, %c0_11] : memref<32x32xbf16, #tpu.memory_space<vmem>>, vector<32x32xbf16>
    %cst_12 = arith.constant dense<0.000000e+00> : vector<8x32xf32>
    %9 = tpu.matmul %3, %8, %cst_12 {dimension_numbers = #tpu.dot_dimension_numbers<[1], [0], [0], [1], [0, 0, 1, 1], [], []>} : vector<8x32xbf16>, vector<32x32xbf16>, vector<8x32xf32> -> vector<8x32xf32>
    %c0_13 = arith.constant 0 : index
    %c0_14 = arith.constant 0 : index
    %10 = vector.load %arg6[%c0_13, %c0_14] : memref<32x32xbf16, #tpu.memory_space<vmem>>, vector<32x32xbf16>
    %cst_15 = arith.constant dense<0.000000e+00> : vector<8x32xf32>
    %11 = tpu.matmul %5, %10, %cst_15 {dimension_numbers = #tpu.dot_dimension_numbers<[1], [0], [0], [1], [0, 0, 1, 1], [], []>} : vector<8x32xbf16>, vector<32x32xbf16>, vector<8x32xf32> -> vector<8x32xf32>
    %12 = vector.shape_cast %7 : vector<8x32xf32> to vector<1x8x32xf32>
    %13 = arith.truncf %12 : vector<1x8x32xf32> to vector<1x8x32xbf16>
    %14 = vector.shape_cast %9 : vector<8x32xf32> to vector<1x8x32xf32>
    %15 = arith.truncf %14 : vector<1x8x32xf32> to vector<1x8x32xbf16>
    %16 = vector.shape_cast %11 : vector<8x32xf32> to vector<1x8x32xf32>
    %17 = arith.truncf %16 : vector<1x8x32xf32> to vector<1x8x32xbf16>
    %18 = vector.extract_strided_slice %13 {offsets = [0, 0, 0], sizes = [1, 8, 8], strides = [1, 1, 1]} : vector<1x8x32xbf16> to vector<1x8x8xbf16>
    %19 = vector.extract_strided_slice %15 {offsets = [0, 0, 0], sizes = [1, 8, 8], strides = [1, 1, 1]} : vector<1x8x32xbf16> to vector<1x8x8xbf16>
    %20 = vector.extract_strided_slice %17 {offsets = [0, 0, 0], sizes = [1, 8, 8], strides = [1, 1, 1]} : vector<1x8x32xbf16> to vector<1x8x8xbf16>
    "tpu.trace_start"() <{level = 10 : i32, message = "bqd,bkd->bqk"}> : () -> ()
    %cst_16 = arith.constant dense<0.000000e+00> : vector<1x8x8xf32>
    %21 = tpu.matmul %18, %19, %cst_16 {dimension_numbers = #tpu.dot_dimension_numbers<[2], [2], [1], [1], [0, 0, 0, 1, 1, 1], [0], [0]>} : vector<1x8x8xbf16>, vector<1x8x8xbf16>, vector<1x8x8xf32> -> vector<1x8x8xf32>
    "tpu.trace_stop"() : () -> ()
    %cst_17 = arith.constant dense<0xFF800000> : vector<1x8xf32>
    %22 = vector.multi_reduction <maximumf>, %21, %cst_17 [2] : vector<1x8x8xf32> to vector<1x8xf32>
    %23 = vector.shape_cast %22 : vector<1x8xf32> to vector<1x8x1xf32>
    %24 = vector.broadcast %23 : vector<1x8x1xf32> to vector<1x8x8xf32>
    %25 = arith.subf %21, %24 : vector<1x8x8xf32>
    %26 = math.exp %25 : vector<1x8x8xf32>
    %cst_18 = arith.constant dense<0.000000e+00> : vector<1x8xf32>
    %27 = vector.multi_reduction <add>, %26, %cst_18 [2] : vector<1x8x8xf32> to vector<1x8xf32>
    %28 = vector.shape_cast %27 : vector<1x8xf32> to vector<1x8x1xf32>
    %29 = tpu.reciprocal %28 {approx = true} : vector<1x8x1xf32> -> vector<1x8x1xf32>
    %30 = vector.broadcast %29 : vector<1x8x1xf32> to vector<1x8x8xf32>
    %31 = arith.mulf %26, %30 : vector<1x8x8xf32>
    %32 = arith.truncf %31 : vector<1x8x8xf32> to vector<1x8x8xbf16>
    "tpu.trace_start"() <{level = 10 : i32, message = "bqk,bkd->bqd"}> : () -> ()
    %cst_19 = arith.constant dense<0.000000e+00> : vector<1x8x8xf32>
    %33 = tpu.matmul %32, %20, %cst_19 {dimension_numbers = #tpu.dot_dimension_numbers<[2], [1], [1], [2], [0, 0, 0, 1, 1, 2], [0], [0]>} : vector<1x8x8xbf16>, vector<1x8x8xbf16>, vector<1x8x8xf32> -> vector<1x8x8xf32>
    "tpu.trace_stop"() : () -> ()
    %34 = arith.truncf %33 : vector<1x8x8xf32> to vector<1x8x8xbf16>
    %35 = vector.extract_strided_slice %13 {offsets = [0, 0, 8], sizes = [1, 8, 8], strides = [1, 1, 1]} : vector<1x8x32xbf16> to vector<1x8x8xbf16>
    %36 = vector.extract_strided_slice %15 {offsets = [0, 0, 8], sizes = [1, 8, 8], strides = [1, 1, 1]} : vector<1x8x32xbf16> to vector<1x8x8xbf16>
    %37 = vector.extract_strided_slice %17 {offsets = [0, 0, 8], sizes = [1, 8, 8], strides = [1, 1, 1]} : vector<1x8x32xbf16> to vector<1x8x8xbf16>
    "tpu.trace_start"() <{level = 10 : i32, message = "bqd,bkd->bqk"}> : () -> ()
    %cst_20 = arith.constant dense<0.000000e+00> : vector<1x8x8xf32>
    %38 = tpu.matmul %35, %36, %cst_20 {dimension_numbers = #tpu.dot_dimension_numbers<[2], [2], [1], [1], [0, 0, 0, 1, 1, 1], [0], [0]>} : vector<1x8x8xbf16>, vector<1x8x8xbf16>, vector<1x8x8xf32> -> vector<1x8x8xf32>
    "tpu.trace_stop"() : () -> ()
    %cst_21 = arith.constant dense<0xFF800000> : vector<1x8xf32>
    %39 = vector.multi_reduction <maximumf>, %38, %cst_21 [2] : vector<1x8x8xf32> to vector<1x8xf32>
    %40 = vector.shape_cast %39 : vector<1x8xf32> to vector<1x8x1xf32>
    %41 = vector.broadcast %40 : vector<1x8x1xf32> to vector<1x8x8xf32>
    %42 = arith.subf %38, %41 : vector<1x8x8xf32>
    %43 = math.exp %42 : vector<1x8x8xf32>
    %cst_22 = arith.constant dense<0.000000e+00> : vector<1x8xf32>
    %44 = vector.multi_reduction <add>, %43, %cst_22 [2] : vector<1x8x8xf32> to vector<1x8xf32>
    %45 = vector.shape_cast %44 : vector<1x8xf32> to vector<1x8x1xf32>
    %46 = tpu.reciprocal %45 {approx = true} : vector<1x8x1xf32> -> vector<1x8x1xf32>
    %47 = vector.broadcast %46 : vector<1x8x1xf32> to vector<1x8x8xf32>
    %48 = arith.mulf %43, %47 : vector<1x8x8xf32>
    %49 = arith.truncf %48 : vector<1x8x8xf32> to vector<1x8x8xbf16>
    "tpu.trace_start"() <{level = 10 : i32, message = "bqk,bkd->bqd"}> : () -> ()
    %cst_23 = arith.constant dense<0.000000e+00> : vector<1x8x8xf32>
    %50 = tpu.matmul %49, %37, %cst_23 {dimension_numbers = #tpu.dot_dimension_numbers<[2], [1], [1], [2], [0, 0, 0, 1, 1, 2], [0], [0]>} : vector<1x8x8xbf16>, vector<1x8x8xbf16>, vector<1x8x8xf32> -> vector<1x8x8xf32>
    "tpu.trace_stop"() : () -> ()
    %51 = arith.truncf %50 : vector<1x8x8xf32> to vector<1x8x8xbf16>
    %52 = vector.extract_strided_slice %13 {offsets = [0, 0, 16], sizes = [1, 8, 8], strides = [1, 1, 1]} : vector<1x8x32xbf16> to vector<1x8x8xbf16>
    %53 = vector.extract_strided_slice %15 {offsets = [0, 0, 16], sizes = [1, 8, 8], strides = [1, 1, 1]} : vector<1x8x32xbf16> to vector<1x8x8xbf16>
    %54 = vector.extract_strided_slice %17 {offsets = [0, 0, 16], sizes = [1, 8, 8], strides = [1, 1, 1]} : vector<1x8x32xbf16> to vector<1x8x8xbf16>
    "tpu.trace_start"() <{level = 10 : i32, message = "bqd,bkd->bqk"}> : () -> ()
    %cst_24 = arith.constant dense<0.000000e+00> : vector<1x8x8xf32>
    %55 = tpu.matmul %52, %53, %cst_24 {dimension_numbers = #tpu.dot_dimension_numbers<[2], [2], [1], [1], [0, 0, 0, 1, 1, 1], [0], [0]>} : vector<1x8x8xbf16>, vector<1x8x8xbf16>, vector<1x8x8xf32> -> vector<1x8x8xf32>
    "tpu.trace_stop"() : () -> ()
    %cst_25 = arith.constant dense<0xFF800000> : vector<1x8xf32>
    %56 = vector.multi_reduction <maximumf>, %55, %cst_25 [2] : vector<1x8x8xf32> to vector<1x8xf32>
    %57 = vector.shape_cast %56 : vector<1x8xf32> to vector<1x8x1xf32>
    %58 = vector.broadcast %57 : vector<1x8x1xf32> to vector<1x8x8xf32>
    %59 = arith.subf %55, %58 : vector<1x8x8xf32>
    %60 = math.exp %59 : vector<1x8x8xf32>
    %cst_26 = arith.constant dense<0.000000e+00> : vector<1x8xf32>
    %61 = vector.multi_reduction <add>, %60, %cst_26 [2] : vector<1x8x8xf32> to vector<1x8xf32>
    %62 = vector.shape_cast %61 : vector<1x8xf32> to vector<1x8x1xf32>
    %63 = tpu.reciprocal %62 {approx = true} : vector<1x8x1xf32> -> vector<1x8x1xf32>
    %64 = vector.broadcast %63 : vector<1x8x1xf32> to vector<1x8x8xf32>
    %65 = arith.mulf %60, %64 : vector<1x8x8xf32>
    %66 = arith.truncf %65 : vector<1x8x8xf32> to vector<1x8x8xbf16>
    "tpu.trace_start"() <{level = 10 : i32, message = "bqk,bkd->bqd"}> : () -> ()
    %cst_27 = arith.constant dense<0.000000e+00> : vector<1x8x8xf32>
    %67 = tpu.matmul %66, %54, %cst_27 {dimension_numbers = #tpu.dot_dimension_numbers<[2], [1], [1], [2], [0, 0, 0, 1, 1, 2], [0], [0]>} : vector<1x8x8xbf16>, vector<1x8x8xbf16>, vector<1x8x8xf32> -> vector<1x8x8xf32>
    "tpu.trace_stop"() : () -> ()
    %68 = arith.truncf %67 : vector<1x8x8xf32> to vector<1x8x8xbf16>
    %69 = vector.extract_strided_slice %13 {offsets = [0, 0, 24], sizes = [1, 8, 8], strides = [1, 1, 1]} : vector<1x8x32xbf16> to vector<1x8x8xbf16>
    %70 = vector.extract_strided_slice %15 {offsets = [0, 0, 24], sizes = [1, 8, 8], strides = [1, 1, 1]} : vector<1x8x32xbf16> to vector<1x8x8xbf16>
    %71 = vector.extract_strided_slice %17 {offsets = [0, 0, 24], sizes = [1, 8, 8], strides = [1, 1, 1]} : vector<1x8x32xbf16> to vector<1x8x8xbf16>
    "tpu.trace_start"() <{level = 10 : i32, message = "bqd,bkd->bqk"}> : () -> ()
    %cst_28 = arith.constant dense<0.000000e+00> : vector<1x8x8xf32>
    %72 = tpu.matmul %69, %70, %cst_28 {dimension_numbers = #tpu.dot_dimension_numbers<[2], [2], [1], [1], [0, 0, 0, 1, 1, 1], [0], [0]>} : vector<1x8x8xbf16>, vector<1x8x8xbf16>, vector<1x8x8xf32> -> vector<1x8x8xf32>
    "tpu.trace_stop"() : () -> ()
    %cst_29 = arith.constant dense<0xFF800000> : vector<1x8xf32>
    %73 = vector.multi_reduction <maximumf>, %72, %cst_29 [2] : vector<1x8x8xf32> to vector<1x8xf32>
    %74 = vector.shape_cast %73 : vector<1x8xf32> to vector<1x8x1xf32>
    %75 = vector.broadcast %74 : vector<1x8x1xf32> to vector<1x8x8xf32>
    %76 = arith.subf %72, %75 : vector<1x8x8xf32>
    %77 = math.exp %76 : vector<1x8x8xf32>
    %cst_30 = arith.constant dense<0.000000e+00> : vector<1x8xf32>
    %78 = vector.multi_reduction <add>, %77, %cst_30 [2] : vector<1x8x8xf32> to vector<1x8xf32>
    %79 = vector.shape_cast %78 : vector<1x8xf32> to vector<1x8x1xf32>
    %80 = tpu.reciprocal %79 {approx = true} : vector<1x8x1xf32> -> vector<1x8x1xf32>
    %81 = vector.broadcast %80 : vector<1x8x1xf32> to vector<1x8x8xf32>
    %82 = arith.mulf %77, %81 : vector<1x8x8xf32>
    %83 = arith.truncf %82 : vector<1x8x8xf32> to vector<1x8x8xbf16>
    "tpu.trace_start"() <{level = 10 : i32, message = "bqk,bkd->bqd"}> : () -> ()
    %cst_31 = arith.constant dense<0.000000e+00> : vector<1x8x8xf32>
    %84 = tpu.matmul %83, %71, %cst_31 {dimension_numbers = #tpu.dot_dimension_numbers<[2], [1], [1], [2], [0, 0, 0, 1, 1, 2], [0], [0]>} : vector<1x8x8xbf16>, vector<1x8x8xbf16>, vector<1x8x8xf32> -> vector<1x8x8xf32>
    "tpu.trace_stop"() : () -> ()
    %85 = arith.truncf %84 : vector<1x8x8xf32> to vector<1x8x8xbf16>
    %86 = tpu.concatenate %34, %51, %68, %85 in 2 : vector<1x8x8xbf16>, vector<1x8x8xbf16>, vector<1x8x8xbf16>, vector<1x8x8xbf16> -> vector<1x8x32xbf16>
    %87 = vector.shape_cast %86 : vector<1x8x32xbf16> to vector<8x32xbf16>
    %c0_32 = arith.constant 0 : index
    %c0_33 = arith.constant 0 : index
    %88 = vector.load %arg7[%c0_32, %c0_33] : memref<32x32xbf16, #tpu.memory_space<vmem>>, vector<32x32xbf16>
    %cst_34 = arith.constant dense<0.000000e+00> : vector<8x32xf32>
    %89 = tpu.matmul %87, %88, %cst_34 {dimension_numbers = #tpu.dot_dimension_numbers<[1], [0], [0], [1], [0, 0, 1, 1], [], []>} : vector<8x32xbf16>, vector<32x32xbf16>, vector<8x32xf32> -> vector<8x32xf32>
    %c0_35 = arith.constant 0 : index
    %c0_36 = arith.constant 0 : index
    %90 = vector.load %arg8[%c0_35, %c0_36] : memref<1x32xf32, #tpu.memory_space<vmem>>, vector<1x32xf32>
    %91 = vector.broadcast %90 : vector<1x32xf32> to vector<8x32xf32>
    %92 = arith.addf %89, %91 : vector<8x32xf32>
    %93 = vector.shape_cast %92 : vector<8x32xf32> to vector<1x8x32xf32>
    %c0_37 = arith.constant 0 : index
    %c0_38 = arith.constant 0 : index
    %c0_39 = arith.constant 0 : index
    %94 = vector.load %arg9[%c0_37, %c0_38, %c0_39] : memref<1x8x32xf32, #tpu.memory_space<vmem>>, vector<1x8x32xf32>
    tpu.vector_store %arg9[%c0_37, %c0_38, %c0_39], %93 {strides = array<i32>} : memref<1x8x32xf32, #tpu.memory_space<vmem>>, vector<1x8x32xf32>,
    return
  }
  func.func @transform_0(%arg0: i32) -> (i32, i32, i32) {
    %c0_i32 = arith.constant 0 : i32
    %c0_i32_0 = arith.constant 0 : i32
    %c0_i32_1 = arith.constant 0 : i32
    return %arg0, %c0_i32, %c0_i32_0 : i32, i32, i32
  }
  func.func @transform_1(%arg0: i32) -> (i32, i32, i32) {
    %c0_i32 = arith.constant 0 : i32
    %c0_i32_0 = arith.constant 0 : i32
    %c0_i32_1 = arith.constant 0 : i32
    return %arg0, %c0_i32, %c0_i32_0 : i32, i32, i32
  }
  func.func @transform_2(%arg0: i32) -> (i32, i32, i32) {
    %c0_i32 = arith.constant 0 : i32
    %c0_i32_0 = arith.constant 0 : i32
    %c0_i32_1 = arith.constant 0 : i32
    return %arg0, %c0_i32, %c0_i32_0 : i32, i32, i32
  }
  func.func @transform_3(%arg0: i32) -> (i32, i32) {
    %c0_i32 = arith.constant 0 : i32
    %c0_i32_0 = arith.constant 0 : i32
    %c0_i32_1 = arith.constant 0 : i32
    return %c0_i32, %c0_i32_0 : i32, i32
  }
  func.func @transform_4(%arg0: i32) -> (i32, i32) {
    %c0_i32 = arith.constant 0 : i32
    %c0_i32_0 = arith.constant 0 : i32
    %c0_i32_1 = arith.constant 0 : i32
    return %c0_i32, %c0_i32_0 : i32, i32
  }
  func.func @transform_5(%arg0: i32) -> (i32, i32) {
    %c0_i32 = arith.constant 0 : i32
    %c0_i32_0 = arith.constant 0 : i32
    %c0_i32_1 = arith.constant 0 : i32
    return %c0_i32, %c0_i32_0 : i32, i32
  }
  func.func @transform_6(%arg0: i32) -> (i32, i32) {
    %c0_i32 = arith.constant 0 : i32
    %c0_i32_0 = arith.constant 0 : i32
    %c0_i32_1 = arith.constant 0 : i32
    return %c0_i32, %c0_i32_0 : i32, i32
  }
  func.func @transform_7(%arg0: i32) -> (i32, i32) {
    %c0_i32 = arith.constant 0 : i32
    %c0_i32_0 = arith.constant 0 : i32
    %c0_i32_1 = arith.constant 0 : i32
    return %c0_i32, %c0_i32_0 : i32, i32
  }
  func.func @transform_8(%arg0: i32) -> (i32, i32, i32) {
    %c0_i32 = arith.constant 0 : i32
    %c0_i32_0 = arith.constant 0 : i32
    %c0_i32_1 = arith.constant 0 : i32
    return %arg0, %c0_i32, %c0_i32_0 : i32, i32, i32
  }
}

</mosaic_0001>

<bundles_post_ra>
// kernel: tpu_custom_call.1
= control target key start
LH: loop header
LB: loop body
LE: loop exit
PB: predicated region body
PF: predicated region fallthrough
CT: control target
= control target key end

     0   :  { %s2315_s0 = inlined_call_operand.hbm [shape: bf16[2,8,32], index: 0, kind: input, shape index: {}]   ;;  %s2316_s1 = inlined_call_operand.hbm [shape: bf16[2,8,32], index: 1, kind: input, shape index: {}]   ;;  %s2317_s2 = inlined_call_operand.hbm [shape: bf16[2,8,32], index: 2, kind: input, shape index: {}]   ;;  %s2318_s3 = inlined_call_operand.hbm [shape: bf16[32,32], index: 3, kind: input, shape index: {}]   ;;  %s2319_s4 = inlined_call_operand.hbm [shape: bf16[32,32], index: 4, kind: input, shape index: {}]   ;;  %s2320_s5 = inlined_call_operand.hbm [shape: bf16[32,32], index: 5, kind: input, shape index: {}]   ;;  %s2321_s6 = inlined_call_operand.hbm [shape: bf16[32,32], index: 6, kind: input, shape index: {}]   ;;  %s2322_s7 = inlined_call_operand.vmem [shape: f32[1,32], index: 7, kind: input, shape index: {}]   ;;  %s2323_s8 = inlined_call_operand.hbm [shape: f32[2,8,32], index: 8, kind: output, shape index: {}]  }
   0x1   :  { %2342 = sst [smem:[#allocation24_spill]] %s2315_s0 }
   0x2   :  { %2343 = sst [smem:[#allocation25_spill]] %s2316_s1 }
   0x3   :  { %2344 = sst [smem:[#allocation26_spill]] %s2318_s3 }
   0x4   :  { %2345 = sst [smem:[#allocation27_spill]] %s2320_s5 }
   0x5   :  { %13 = vsyncpa [#allocation3], 0 }
   0x6   :  { %15 = vsyncpa [#allocation3 + $0x1], 0 }
   0x7   :  { %16 = vsyncpa [#allocation6], 0 }
   0x8   :  { %18 = vsyncpa [#allocation6 + $0x1], 0 }
   0x9   :  { %19 = vsyncpa [#allocation9], 0 }
   0xa   :  { %20 = vsyncpa [#allocation12], 0 }
   0xb   :  { %21 = vsyncpa [#allocation4], 0 }
   0xc   :  { %23 = vsyncpa [#allocation4 + $0x1], 0  ;;  %s1942_s27 = smov 0   ;;  %s1944_s28 = smov 0  }
   0xd   :  { %s1946_s29 = smov 0   ;;  %s1948_s30 = smov 0  }
   0xe LB: > { %2346 = sst [smem:[#allocation20_spill]] %s1877_s30  ;;  %s1879_s9 = smov [#allocation8]   ;;  %s1877_s30 = sphi %s1948_s30, %s2379_s30   ;;  %s1873_s29 = sphi %s1946_s29, %s2383_s29   ;;  %s1869_s28 = sphi %s1944_s28, %s2382_s28   ;;  %s1865_s27 = sphi %s1942_s27, %s2381_s27  }
   0xf   : > { %s255_s10 = sshll.u32 %s1879_s9, 4  ;;  %s1963_s11 = sadd.s32 4294967295, %s1877_s30   ;;  %s256_s10 = int_to_ptr.vmem [resolvable:$true] %s255_s10 }
  0x10   : > { %p1328_p0 = scmp.ge.s32.totalorder %s1877_s30, 1  ;;  %p2334_p1 = scmp.eq.s32.totalorder %s1963_s11, 0 }
  0x11   : > { %p243_p2 = scmp.lt.s32.totalorder %s1877_s30, 3  ;;  %s1880_s13 = smov [#allocation11]  }
  0x12   : > { %s281_s14 = sshll.u32 %s1880_s13, 4  ;;  %s1624_s16 = scalar_lea.vmem %s256_s10, 256  ;;  %s282_s14 = int_to_ptr.vmem [resolvable:$true] %s281_s14 }
  0x13   : > { %p1968_p3 = pnand %p1328_p0, %p243_p2  ;;  %p1625_p8 = scmp.ne.s32.totalorder %s256_s10, %s1624_s16 }
  0x14   : > { %p1632_p11 = scmp.lt.s32.totalorder %s256_s10, %s256_s10  ;;  %p1633_p12 = scmp.lt.s32.totalorder %s1624_s16, %s1624_s16 }
  0x15   : > { %s2347_s12 = scalar_select %p1968_p3, 1, 0 }
  0x16   : > { %p1506_p5 = pneg %p1968_p3  ;;  %p1634_p13 = por %p1633_p12, %p1632_p11 }
  0x18   : > { %p1977_p6 = pnand %p1506_p5, %p2334_p1 }
  0x1a   : > { %s2348_s15 = scalar_select %p1977_p6, 1, 0 }
  0x1b   : > { %p2324_p7 = pneg %p1977_p6 }
  0x1d   : > { %p1627_p9 = pnand %p1625_p8, %p2324_p7 }
  0x1f   : > { %p1628_p10 = pneg %p1627_p9 }
  0x21   : > { %p1635_p0 = pnand %p1634_p13, %p1628_p10 }
  0x23   : > { %1638 = shalt.err (!%p1635_p0)
}
  0x24   : > { %s2326_s17 = smov 64   ;;  %s2328_s18 = smov 4  }
  0x25   : > { %s2349_s3 = sld [smem:[#allocation26_spill]]  ;;  %s1650_s21 = scalar_lea.vmem %s282_s14, 256 }
  0x26   : > { %p1651_p2 = scmp.ne.s32.totalorder %s282_s14, %s1650_s21  ;;  %p1658_p9 = scmp.lt.s32.totalorder %s282_s14, %s282_s14 }
  0x27   : > { %p1659_p10 = scmp.lt.s32.totalorder %s1650_s21, %s1650_s21 }
  0x28   : > { %p1653_p5 = pnand %p1651_p2, %p2324_p7 }
  0x29   : > { %p1660_p11 = por %p1659_p10, %p1658_p9 }
  0x2a   : > { %p1654_p8 = pneg %p1653_p5 }
  0x2b   : > { %1509 = dma.hbm_to_vmem [thread:$0]  (!%p1977_p6), %s2349_s3, 256, %s256_s10, [#allocation9], %s2326_s17, %s2326_s17, %s2328_s18  }
  0x2c   : > { %p1661_p12 = pnand %p1660_p11, %p1654_p8 }
  0x2e   : > { %1664 = shalt.err (!%p1661_p12)
}
  0x2f   : > { %s2350_s5 = sld [smem:[#allocation27_spill]]  ;;  %s1327_s24 = sadd.s32 4294967294, %s1877_s30  }
  0x30   : > { %s2007_s25 = sadd.s32 1, %s1877_s30   ;;  %s36_s9 = sadd.s32 1, %s1873_s29 }
  0x31   : > { %2351 = sst [smem:[#allocation21_spill]] %s2007_s25  ;;  %s33_s26 = ssub.s32 %s1877_s30, %s2007_s25 }
  0x32   : > { %p34_p13 = scmp.eq.s32.totalorder %s33_s26, 0  ;;  %p43_p0 = scmp.ne.s32.totalorder %s1873_s29, %s1869_s28 }
  0x33   : > { %p44_p2 = scmp.eq.s32.totalorder %s1877_s30, 0  ;;  %p49_p5 = scmp.ne.s32.totalorder %s1869_s28, %s1865_s27 }
  0x34   : > { %s2018_s10 = scalar_select %p34_p13, %s1873_s29, %s36_s9  }
  0x35   : > { %1515 = dma.hbm_to_vmem [thread:$0]  (!%p1977_p6), %s2350_s5, 256, %s282_s14, [#allocation12], %s2326_s17, %s2326_s17, %s2328_s18  }
  0x36   : > { %2352 = sst [smem:[#allocation22_spill]] %s2018_s10  ;;  %p45_p8 = por %p44_p2, %p43_p0 }
  0x37   : > { %p2022_p9 = por %p2334_p1, %p49_p5  ;;  %p230_p10 = scmp.eq.s32.totalorder %s1963_s11, 1 }
  0x38   : > { %p236_p11 = scmp.eq.s32.totalorder %s1327_s24, 1  ;;  %p1537_p12 = scmp.lt.s32.totalorder %s1877_s30, 2 }
  0x39   : > { %s2353_s13 = scalar_select %p2022_p9, 1, 0 }
  0x3a   : > { %s2325_s14 = sand.u32 1, %s1873_s29   ;;  %p2029_p4 = por %p230_p10, %p43_p0 }
  0x3b   : > { %p2033_p7 = por %p236_p11, %p49_p5  ;;  %s2039_s20 = sshll.u32 %s2325_s14, 2 }
  0x3c   : > { %s2354_s16 = scalar_select %p2029_p4, 1, 0 }
  0x3d   : > { %s2355_s19 = scalar_select %p2033_p7, 1, 0 }
  0x3e   : > { %s2042_s21 = sshll.u32 %s1877_s30, 6  ;;  %p2044_p13 = pnand %p1537_p12, %p45_p8 }
  0x3f   : > { %2356 = sst [smem:[#allocation23_spill]] %s2355_s19  ;;  %s329_s23 = sand.u32 1, %s1877_s30  }
  0x40   : > { %s2358_s1 = sld [smem:[#allocation25_spill]]  ;;  %s333_s14 = scalar_lea.vmem [#allocation5], %s2039_s20 }
  0x41   : > { %s340_s17 = sshll.u32 %s333_s14, 4  ;;  %s1883_s18 = smov [#allocation10]   ;;  %s2056_s17 = int_to_ptr.vmem [resolvable:$true] %s340_s17 }
  0x42   : > { %s268_s3 = sshll.u32 %s1883_s18, 4  ;;  %s2058_s5 = scalar_lea.sflag [#allocation6], %s329_s23  ;;  %s269_s3 = int_to_ptr.vmem [resolvable:$true] %s268_s3 }
  0x43   : > { %p2064_p2 = pneg %p2044_p13 }
  0x45   : > { %s2359_s25 = scalar_select %p2064_p2, 1, 0 }
  0x46   : > { %s2053_s9 = scalar_lea.hbm %s2358_s1, %s2042_s21  ;;  %s1670_s14 = scalar_lea.hbm %s2358_s1, 128 }
  0x47   : > { %s1665_s10 = scalar_lea.hbm %s2053_s9, 64  ;;  %p1671_p10 = scmp.lt.s32.totalorder %s2053_s9, %s2358_s1 }
  0x48   : > { %p1666_p0 = scmp.ne.s32.totalorder %s2053_s9, %s1665_s10  ;;  %p1672_p11 = scmp.lt.s32.totalorder %s1670_s14, %s1665_s10 }
  0x4a   : > { %p1668_p5 = pnand %p2064_p2, %p1666_p0  ;;  %p1673_p12 = por %p1672_p11, %p1671_p10 }
  0x4c   : > { %p1669_p8 = pneg %p1668_p5 }
  0x4e   : > { %p1674_p1 = pnand %p1673_p12, %p1669_p8 }
  0x50   : > { %1677 = shalt.err (!%p1674_p1)
}
  0x51   : > { %s1678_s18 = scalar_lea.vmem %s2056_s17, 64  ;;  %s1884_s23 = smov [#allocation5]  }
  0x52   : > { %p1679_p7 = scmp.ne.s32.totalorder %s2056_s17, %s1678_s18  ;;  %s1683_s24 = sshll.u32 %s1884_s23, 4  ;;  %s1684_s24 = int_to_ptr.vmem [resolvable:$false] %s1683_s24 }
  0x53   : > { %s1685_s26 = scalar_lea.vmem %s1684_s24, 128  ;;  %p1686_p4 = scmp.lt.s32.totalorder %s2056_s17, %s1684_s24 }
  0x54   : > { %p1681_p0 = pnand %p1679_p7, %p2064_p2  ;;  %p1687_p9 = scmp.lt.s32.totalorder %s1685_s26, %s1678_s18 }
  0x56   : > { %p1682_p5 = pneg %p1681_p0  ;;  %p1688_p3 = por %p1687_p9, %p1686_p4 }
  0x58   : > { %p1689_p6 = pnand %p1688_p3, %p1682_p5 }
  0x5a   : > { %1692 = shalt.err (!%p1689_p6)
}
  0x5b   : > { %1525 = dma.hbm_to_vmem [thread:$0]  (!%p2044_p13), %s2053_s9, 64, %s2056_s17, %s2058_s5  }
  0x5c   : > { %s1704_s30 = scalar_lea.vmem %s269_s3, 256  ;;  %p2360_p7 = scmp.ne.s32.totalorder %s2348_s15, 0 }
  0x5d   : > { %p1705_p1 = scmp.ne.s32.totalorder %s269_s3, %s1704_s30  ;;  %p1712_p12 = scmp.lt.s32.totalorder %s269_s3, %s269_s3 }
  0x5e   : > { %p2361_p8 = pneg %p2360_p7  ;;  %p1713_p0 = scmp.lt.s32.totalorder %s1704_s30, %s1704_s30 }
  0x60   : > { %p1707_p10 = pnand %p1705_p1, %p2361_p8  ;;  %p1714_p2 = por %p1713_p0, %p1712_p12 }
  0x62   : > { %p1708_p11 = pneg %p1707_p10 }
  0x64   : > { %p1715_p4 = pnand %p1714_p2, %p1708_p11 }
  0x66   : > { %1718 = shalt.err (!%p1715_p4)
}
  0x67   : > { %s2362_s10 = smov 4   ;;  %s2363_s19 = smov 64  }
  0x68   : > { %1512 = dma.hbm_to_vmem [thread:$0]  (!%p2360_p7), %s2319_s4, 256, %s269_s3, [#allocation9], %s2363_s19, %s2363_s19, %s2362_s10  }
  0x69   : > { %s1885_s17 = smov [#allocation13]   ;;  %p2364_p6 = pmov %p2361_p8 }
  0x6a   : > { %s294_s9 = sshll.u32 %s1885_s17, 4  ;;  %s295_s9 = int_to_ptr.vmem [resolvable:$true] %s294_s9 }
  0x6b   : > { %s1730_s23 = scalar_lea.vmem %s295_s9, 256  ;;  %p1738_p5 = scmp.lt.s32.totalorder %s295_s9, %s295_s9 }
  0x6c   : > { %p1731_p3 = scmp.ne.s32.totalorder %s295_s9, %s1730_s23  ;;  %p1739_p1 = scmp.lt.s32.totalorder %s1730_s23, %s1730_s23 }
  0x6e   : > { %p1733_p9 = pnand %p1731_p3, %p2364_p6  ;;  %p1740_p8 = por %p1739_p1, %p1738_p5 }
  0x70   : > { %p1734_p2 = pneg %p1733_p9 }
  0x72   : > { %p1741_p10 = pnand %p1740_p8, %p1734_p2 }
  0x74   : > { %1744 = shalt.err (!%p1741_p10)
}
  0x75   : > { %1518 = dma.hbm_to_vmem [thread:$0]  (!%p2360_p7), %s2321_s6, 256, %s295_s9, [#allocation12], %s2363_s19, %s2363_s19, %s2362_s10  }
  0x76   : > { %s2365_s0 = sld [smem:[#allocation24_spill]]  ;;  %s315_s15 = scalar_lea.vmem [#allocation2], %s2039_s20 }
  0x77   : > { %s322_s18 = sshll.u32 %s315_s15, 4  ;;  %s2366_s17 = sand.u32 1, %s1873_s29   ;;  %s323_s18 = int_to_ptr.vmem [resolvable:$true] %s322_s18 }
  0x78   : > { %s312_s23 = scalar_lea.sflag [#allocation3], %s2366_s17  ;;  %p2367_p12 = scmp.ne.s32.totalorder %s2359_s25, 0 }
  0x7c   : > { %s2113_s14 = scalar_lea.hbm %s2365_s0, %s2042_s21  ;;  %s1750_s19 = scalar_lea.hbm %s2365_s0, 128 }
  0x7d   : > { %s1745_s1 = scalar_lea.hbm %s2113_s14, 64  ;;  %p1751_p7 = scmp.lt.s32.totalorder %s2113_s14, %s2365_s0 }
  0x7e   : > { %p1746_p11 = scmp.ne.s32.totalorder %s2113_s14, %s1745_s1  ;;  %p1752_p3 = scmp.lt.s32.totalorder %s1750_s19, %s1745_s1 }
  0x80   : > { %p1748_p0 = pnand %p1746_p11, %p2367_p12  ;;  %p1753_p6 = por %p1752_p3, %p1751_p7 }
  0x82   : > { %p1749_p4 = pneg %p1748_p0 }
  0x84   : > { %p1754_p9 = pnand %p1753_p6, %p1749_p4 }
  0x86   : > { %1757 = shalt.err (!%p1754_p9)
}
  0x87   : > { %s1758_s26 = scalar_lea.vmem %s323_s18, 64  ;;  %s1886_s30 = smov [#allocation2]  }
  0x88   : > { %p1759_p2 = scmp.ne.s32.totalorder %s323_s18, %s1758_s26  ;;  %s1763_s15 = sshll.u32 %s1886_s30, 4  ;;  %s1764_s15 = int_to_ptr.vmem [resolvable:$false] %s1763_s15 }
  0x89   : > { %s1765_s17 = scalar_lea.vmem %s1764_s15, 128  ;;  %p1766_p8 = scmp.lt.s32.totalorder %s323_s18, %s1764_s15 }
  0x8a   : > { %p1761_p5 = pnand %p1759_p2, %p2367_p12  ;;  %p1767_p10 = scmp.lt.s32.totalorder %s1765_s17, %s1758_s26 }
  0x8c   : > { %p1762_p1 = pneg %p1761_p5  ;;  %p1768_p11 = por %p1767_p10, %p1766_p8 }
  0x8e   : > { %p1769_p0 = pnand %p1768_p11, %p1762_p1 }
  0x90   : > { %1772 = shalt.err (!%p1769_p0)
}
  0x91   : > { %1522 = dma.hbm_to_vmem [thread:$0]  (!%p2044_p13), %s2113_s14, 64, %s323_s18, %s312_s23  }
  0x92   : > { %s356_s10 = scalar_lea.hbm %s2317_s2, %s2042_s21  ;;  %s351_s19 = scalar_lea.vmem [#allocation7], %s2039_s20 }
  0x93   : > { %s358_s9 = sshll.u32 %s351_s19, 4  ;;  %s1773_s24 = scalar_lea.hbm %s356_s10, 64  ;;  %s359_s9 = int_to_ptr.vmem [resolvable:$true] %s358_s9 }
  0x94   : > { %p1774_p4 = scmp.ne.s32.totalorder %s356_s10, %s1773_s24  ;;  %s1778_s15 = scalar_lea.hbm %s2317_s2, 128 }
  0x95   : > { %p1779_p6 = scmp.lt.s32.totalorder %s356_s10, %s2317_s2  ;;  %p1780_p9 = scmp.lt.s32.totalorder %s1778_s15, %s1773_s24 }
  0x96   : > { %p1776_p7 = pnand %p1774_p4, %p2367_p12 }
  0x97   : > { %p1781_p2 = por %p1780_p9, %p1779_p6 }
  0x98   : > { %p1777_p3 = pneg %p1776_p7 }
  0x9a   : > { %p1782_p5 = pnand %p1781_p2, %p1777_p3 }
  0x9c   : > { %1785 = shalt.err (!%p1782_p5)
}
  0x9d   : > { %s1786_s20 = scalar_lea.vmem %s359_s9, 64  ;;  %s1887_s21 = smov [#allocation7]  }
  0x9e   : > { %p1787_p1 = scmp.ne.s32.totalorder %s359_s9, %s1786_s20  ;;  %s1791_s14 = sshll.u32 %s1887_s21, 4  ;;  %s1792_s14 = int_to_ptr.vmem [resolvable:$false] %s1791_s14 }
  0x9f   : > { %s1793_s18 = scalar_lea.vmem %s1792_s14, 128  ;;  %p1794_p11 = scmp.lt.s32.totalorder %s359_s9, %s1792_s14 }
  0xa0   : > { %p1789_p8 = pnand %p1787_p1, %p2367_p12  ;;  %p1795_p0 = scmp.lt.s32.totalorder %s1793_s18, %s1786_s20 }
  0xa2   : > { %p1790_p10 = pneg %p1789_p8  ;;  %p1796_p4 = por %p1795_p0, %p1794_p11 }
  0xa4   : > { %p1797_p7 = pnand %p1796_p4, %p1790_p10 }
  0xa6   : > { %1800 = shalt.err (!%p1797_p7)
}
  0xa7   : > { %1528 = dma.hbm_to_vmem [thread:$0]  (!%p2044_p13), %s356_s10, 64, %s359_s9, %s2058_s5  }
  0xa8   : > { %p2368_p3 = scmp.ne.s32.totalorder %s2347_s12, 0 }
  0xa9   : > { %s2155_s0 = sand.u32 (!%p2368_p3), 1, %s1869_s28   ;;  %p2369_p12 = scmp.ne.s32.totalorder (!%p2368_p3), %s2353_s13, 0 }
  0xaa   : > { %367 = sbr.rel (%p2368_p3) target bundleno = 1557 (0x615), region = 52  ;;  %s2158_s25 = sshll.u32 (!%p2368_p3), %s2155_s0, 2 }
  0xab   : > { %s370_s23 = scalar_lea.sflag (!%p2368_p3), [#allocation3], %s2155_s0  ;;  %s373_s1 = scalar_lea.vmem (!%p2368_p3), [#allocation2], %s2158_s25 }
  0xaf   : > { %1844 = dma.done.wait (%p2369_p12), %s370_s23, 64  }
  0xb0   : > { %1846 = vsyncadd (%p2369_p12), %s370_s23, 4294967232  ;;  %s378_s5 = sand.u32 1, %s1963_s11   ;;  %s382_s22 = scalar_lea.vmem [#allocation5], %s2158_s25 }
  0xb1   : > { %s379_s12 = scalar_lea.sflag [#allocation6], %s378_s5 }
  0xb2   : > { %1848 = dma.done.wait (%p2369_p12), %s379_s12, 128  }
  0xb3   : > { %1850 = vsyncadd (%p2369_p12), %s379_s12, 4294967168  ;;  %s391_s3 = scalar_lea.vmem [#allocation7], %s2158_s25  ;;  %p2370_p13 = scmp.eq.s32.totalorder %s1963_s11, 0 }
  0xb5   : > { %1852 = dma.done.wait (%p2370_p13), [#allocation9], 512   ;;  %p2371_p6 = pmov %p2370_p13 }
  0xb7   : > { %1854 = vsyncadd (%p2371_p6), [#allocation9], 4294966784  ;;  %p2372_p9 = pmov %p2371_p6 }
  0xb8   : > { %p2373_p2 = pmov %p2371_p6 }
  0xb9   : > { %1856 = dma.done.wait (%p2372_p9), [#allocation12], 512  }
  0xba   : > { %1858 = vsyncadd (%p2373_p2), [#allocation12], 4294966784  ;;  %v1888_v0 = vmov 0.0   ;;  %vm1889_vm0 = vmmov 0   ;;  %v1589_v1 = vld [vmem:[#allocation10 + $0x8] sm:$0xff]   ;;  %v1590_v2 = vld [vmem:[#allocation8 + $0x8] sm:$0xff]  }
  0xbb   : > { %1410 = vmatprep.subr.bf16.mxu1 %v1888_v0  ;;  %1402 = vmatprep.subr.bf16.mxu0 %v1888_v0  ;;  %v1591_v3 = vld [vmem:[#allocation10] sm:$0xff]   ;;  %v1592_v4 = vld [vmem:[#allocation8] sm:$0xff]   ;;  %vm470_vm1 = vcmask 261120   ;;  %v451_v6 = vld [vmem:[%s373_s1] sm:$0xf]  ;;  %vm635_vm2 = vcmask 64512  }
  0xbc   : > { %1414 = vmatprep.mubr.msk.bf16.mxu1 %vm1889_vm0, %v1888_v0  ;;  %1406 = vmatprep.mubr.msk.bf16.mxu0 %vm1889_vm0, %v1888_v0  ;;  %v452_v5 = vld [vmem:[%s382_s22] sm:$0xf]  ;;  %s1890_s13 = smov 112   ;;  %s1891_s10 = smov 120   ;;  %v1593_v18 = vld [vmem:[#allocation11 + $0x8] sm:$0xff]   ;;  %v1594_v19 = vld [vmem:[#allocation11] sm:$0xff]  }
  0xbd   : > { %1411 = vmatpush3.bf16.msra.mxu1 %v1589_v1  ;;  %1403 = vmatpush3.bf16.msra.mxu0 %v1590_v2  ;;  %s1892_s19 = smov 104   ;;  %v453_v20 = vld [vmem:[%s391_s3] sm:$0xf]  ;;  %vm697_vm3 = vcmask 1043456   ;;  %s1893_s9 = smov 8   ;;  %vm1090_vm4 = vcmask 130048  }
  0xbe   : > { %1412 = vmatprep.subr.bf16.mxu1 %v1888_v0  ;;  %1404 = vmatprep.subr.bf16.mxu0 %v1888_v0  ;;  %s1894_s24 = smov 16   ;;  %s1895_s26 = smov 24   ;;  %vm1093_vm5 = vcmask 195584  }
  0xbf   : > { %s1348_s30 = sshll.u32 %s2155_s0, 3  ;;  %s1371_s20 = sshll.u32 %s1963_s11, 7 }
  0xc0   : > { %s449_s21 = scalar_lea.vmem [#allocation14], %s1348_s30  ;;  %s2271_s23 = scalar_lea.hbm %s2323_s8, %s1371_s20 }
  0xc1   : > { %1413 = vmatpush3.bf16.msra.mxu1 %v1591_v3  ;;  %1405 = vmatpush3.bf16.msra.mxu0 %v1592_v4  ;;  %s1176_s14 = sshll.u32 %s449_s21, 4  ;;  %s1163_s1 = scalar_lea.sflag [#allocation4], %s2155_s0  ;;  %s2273_s14 = int_to_ptr.vmem [resolvable:$true] %s1176_s14 }
  0xc2   : > { %1426 = vmatprep.subr.bf16.mxu1 %v1888_v0  ;;  %1418 = vmatprep.subr.bf16.mxu0 %v1888_v0  ;;  %s1801_s11 = scalar_lea.vmem %s2273_s14, 128  ;;  %p2374_p1 = scmp.ne.s32.totalorder %s2354_s16, 0 }
  0xc3   : > { %p1802_p5 = scmp.ne.s32.totalorder %s2273_s14, %s1801_s11  ;;  %s1896_s5 = smov [#allocation14]  }
  0xc4   : > { %1415 = vmatmul.mubr.msk.bf16.vlgmr.msra.gmra.mxu1 %vm470_vm1, %v452_v5  ;;  %1407 = vmatmul.mubr.msk.bf16.vlgmr.msra.gmra.mxu0 %vm470_vm1, %v451_v6  ;;  %s1805_s12 = sshll.u32 %s1896_s5, 4  ;;  %s1806_s12 = int_to_ptr.vmem [resolvable:$false] %s1805_s12 }
  0xc5   : > { %1428 = vmatprep.mubr.msk.bf16.mxu1 %vm1889_vm0, %v1888_v0  ;;  %1422 = vmatprep.mubr.msk.bf16.mxu0 %vm1889_vm0, %v1888_v0  ;;  %p1803_p8 = pnand %p1802_p5, %p2374_p1  ;;  %s1807_s22 = scalar_lea.vmem %s1806_s12, 256 }
  0xc6   : > { %1419 = vmatpush3.bf16.msra.mxu0 %v1593_v18  ;;  %p1808_p11 = scmp.lt.s32.totalorder %s2273_s14, %s1806_s12  ;;  %p1809_p0 = scmp.lt.s32.totalorder %s1807_s22, %s1801_s11 }
  0xc7   : > { %1420 = vmatprep.subr.bf16.mxu0 %v1888_v0  ;;  %p1804_p10 = pneg %p1803_p8 }
  0xc8   : > { %p1810_p4 = por %p1809_p0, %p1808_p11 }
  0xca   : > { %1421 = vmatpush3.bf16.msra.mxu0 %v1594_v19  ;;  %p1811_p7 = pnand %p1810_p4, %p1804_p10 }
  0xcb   : > { %1432 = vmatprep.subr.bf16.mxu0 %v1888_v0 }
  0xcd   : > { %1423 = vmatmul.mubr.msk.bf16.vlgmr.msra.gmra.mxu0 %vm470_vm1, %v453_v20 }
  0xce   : > { %1434 = vmatprep.mubr.msk.bf16.mxu0 %vm1889_vm0, %v1888_v0 }
 0x184   : > { %v567_v7 = vpop.f32.mrf.mxu1  ;;  %v508_v9 = vpop.f32.mrf.mxu0 }
 0x185   : > { %v633_v8 = vpack.c.bf16 %v567_v7, %v567_v7  ;;  %v632_v11 = vpack.c.bf16 %v508_v9, %v508_v9 }
 0x186   : > { %v1416_v10 = vpop.f32.mrf.mxu1  ;;  %v1408_v12 = vpop.f32.mrf.mxu0 }
 0x187   : > { %858 = vrot.lane.b32.xlu1 %v633_v8, %s1890_s13  ;;  %746 = vrot.lane.b32.xlu0 %v633_v8, %s1891_s10  ;;  %v640_v13 = vsel %vm635_vm2, %v633_v8, 0 }
 0x188   : > { %v570_v14 = vpop.f32.mrf.mxu1  ;;  %1427 = vmatpush3.bf16.xpose.msra.mxu1 %v640_v13  ;;  %v511_v15 = vpop.f32.mrf.mxu0 }
 0x189   : > { %1438 = vmatprep.subr.bf16.mxu1 %v1888_v0 }
 0x18a   : > { %v1417_v16 = vpop.f32.mrf.mxu1  ;;  %v1409_v17 = vpop.f32.mrf.mxu0 }
 0x18b   : > { %856 = vrot.lane.b32.xlu1 %v632_v11, %s1890_s13  ;;  %743 = vrot.lane.b32.xlu0 %v632_v11, %s1891_s10 }
 0x18d   : > { %v626_v35 = vpop.f32.mrf.mxu0 }
 0x18e   : > { %v634_v36 = vpack.c.bf16 %v626_v35, %v626_v35 }
 0x18f   : > { %967 = vrot.lane.b32.xlu1 %v632_v11, %s1892_s19  ;;  %969 = vrot.lane.b32.xlu0 %v633_v8, %s1892_s19  ;;  %v1424_v37 = vpop.f32.mrf.mxu0 }
 0x190   : > { %1429 = vmatmul.mubr.msk.bf16.vlgmr.msra.gmra.mxu1 %vm635_vm2, %v632_v11  ;;  %v699_v38 = vsel %vm697_vm3, %v634_v36, 0 }
 0x191   : > { %1440 = vmatprep.mubr.msk.bf16.mxu1 %vm1889_vm0, %v1888_v0  ;;  %v629_v39 = vpop.f32.mrf.mxu0  ;;  %1433 = vmatpush3.bf16.msra.mxu0 %v699_v38 }
 0x192   : > { %1444 = vmatprep.subr.bf16.mxu0 %v1888_v0  ;;  %v1595_v39 = vld [vmem:[#allocation13 + $0x8] sm:$0xff]  }
 0x193   : > { %v1425_v40 = vpop.f32.mrf.mxu0 }
 0x1f9   : > { %v747_v21 = vpop.permute.xlu0 %746  ;;  %v859_v23 = vpop.permute.xlu1 %858 }
 0x1fa   : > { %v752_v22 = vsel %vm635_vm2, %v747_v21, 0  ;;  %v864_v25 = vsel %vm635_vm2, %v859_v23, 0 }
 0x1fb   : > { %1439 = vmatpush3.bf16.xpose.msra.mxu1 %v752_v22 }
 0x1fc   : > { %1450 = vmatprep.subr.bf16.mxu1 %v1888_v0 }
 0x1fd   : > { %v744_v24 = vpop.permute.xlu0 %743  ;;  %v857_v27 = vpop.permute.xlu1 %856 }
 0x201   : > { %v970_v26 = vpop.permute.xlu0 %969  ;;  %v968_v29 = vpop.permute.xlu1 %967 }
 0x202   : > { %1441 = vmatmul.mubr.msk.bf16.vlgmr.msra.gmra.mxu1 %vm635_vm2, %v744_v24  ;;  %v975_v28 = vsel %vm635_vm2, %v970_v26, 0 }
 0x203   : > { %1451 = vmatpush3.bf16.xpose.msra.mxu1 %v864_v25  ;;  %1452 = vmatprep.mubr.msk.bf16.mxu1 %vm1889_vm0, %v1888_v0 }
 0x204   : > { %1462 = vmatprep.subr.bf16.mxu1 %v1888_v0 }
 0x20a   : > { %1453 = vmatmul.mubr.msk.bf16.vlgmr.msra.gmra.mxu1 %vm635_vm2, %v857_v27 }
 0x20b   : > { %1463 = vmatpush3.bf16.xpose.msra.mxu1 %v975_v28  ;;  %1464 = vmatprep.mubr.msk.bf16.mxu1 %vm1889_vm0, %v1888_v0 }
 0x20c   : > { %1474 = vmatprep.subr.bf16.mxu1 %v1888_v0 }
 0x212   : > { %1465 = vmatmul.mubr.msk.bf16.vlgmr.msra.gmra.mxu1 %vm635_vm2, %v968_v29 }
 0x213   : > { %1478 = vmatprep.mubr.msk.bf16.mxu1 %vm1889_vm0, %v1888_v0  ;;  %1475 = vmatpush3.bf16.msra.mxu1 %v1595_v39 }
 0x214   : > { %1476 = vmatprep.subr.bf16.mxu1 %v1888_v0 }
 0x250   : > { %v676_v30 = vpop.f32.mrf.mxu1 }
 0x251   : > { %v682_v31 = vsel %vm635_vm2, %v676_v30, -inf }
 0x252   : > { %683 = vmax.xlane.f32.xlu0 %v682_v31  ;;  %v1430_v32 = vpop.f32.mrf.mxu1 }
 0x254   : > { %v679_v33 = vpop.f32.mrf.mxu1 }
 0x256   : > { %v1431_v34 = vpop.f32.mrf.mxu1 }
 0x2c2   : > { %v788_v41 = vpop.f32.mrf.mxu1 }
 0x2c3   : > { %v794_v42 = vsel %vm635_vm2, %v788_v41, -inf }
 0x2c4   : > { %795 = vmax.xlane.f32.xlu1 %v794_v42  ;;  %v1442_v43 = vpop.f32.mrf.mxu1 }
 0x2c6   : > { %v791_v44 = vpop.f32.mrf.mxu1 }
 0x2c8   : > { %v1443_v45 = vpop.f32.mrf.mxu1 }
 0x2ca   : > { %v900_v46 = vpop.f32.mrf.mxu1 }
 0x2cb   : > { %v906_v47 = vsel %vm635_vm2, %v900_v46, -inf }
 0x2cc   : > { %907 = vmax.xlane.f32.xlu0 %v906_v47  ;;  %v1454_v48 = vpop.f32.mrf.mxu1 }
 0x2ce   : > { %v903_v49 = vpop.f32.mrf.mxu1 }
 0x2d0   : > { %v1455_v50 = vpop.f32.mrf.mxu1 }
 0x2d2   : > { %v1011_v51 = vpop.f32.mrf.mxu1 }
 0x2d3   : > { %v1017_v52 = vsel %vm635_vm2, %v1011_v51, -inf }
 0x2d4   : > { %1018 = vmax.xlane.f32.xlu0 %v1017_v52  ;;  %v1466_v53 = vpop.f32.mrf.mxu1 }
 0x2d6   : > { %v1014_v54 = vpop.f32.mrf.mxu1 }
 0x2d8   : > { %v1467_v55 = vpop.f32.mrf.mxu1 }
 0x2db   : > { %v684_v56 = vpop.xlane.xlu0 %683 }
 0x2dc   : > { %v685_v57 = vsub.f32 %v676_v30, %v684_v56 }
 0x2de   : > { %v686_v58 = vmul.f32 1.442695, %v685_v57 }
 0x2e0   : > { %1597 = vpow2.f32 %v686_v58 }
 0x2ed   : > { %v1598_v59 = vpop.eup %1597 }
 0x2ee   : > { %v688_v60 = vsel %vm635_vm2, %v1598_v59, 0.0 }
 0x2ef   : > { %689 = vadd.xlane.f32.xlu1 %v688_v60 }
 0x300   : > { %807 = vrot.lane.b32.xlu1 %v634_v36, %s1891_s10 }
 0x34d   : > { %v796_v61 = vpop.xlane.xlu1 %795 }
 0x34e   : > { %v797_v62 = vsub.f32 %v788_v41, %v796_v61  ;;  %v1596_v41 = vld [vmem:[#allocation13] sm:$0xff]  }
 0x34f   : > { %1477 = vmatpush3.bf16.msra.mxu1 %v1596_v41 }
 0x350   : > { %v798_v63 = vmul.f32 1.442695, %v797_v62  ;;  %v1366_v62 = vld [vmem:[%s2322_s7] ss:$0 sm:$0xff] }
 0x352   : > { %1599 = vpow2.f32 %v798_v63 }
 0x355   : > { %v908_v1 = vpop.xlane.xlu0 %907 }
 0x356   : > { %v909_v2 = vsub.f32 %v900_v46, %v908_v1 }
 0x358   : > { %v910_v3 = vmul.f32 1.442695, %v909_v2 }
 0x35a   : > { %1601 = vpow2.f32 %v910_v3 }
 0x35d   : > { %v1019_v4 = vpop.xlane.xlu0 %1018 }
 0x35e   : > { %v1020_v5 = vsub.f32 %v1011_v51, %v1019_v4 }
 0x35f   : > { %v1600_v6 = vpop.eup %1599 }
 0x360   : > { %v1021_v7 = vmul.f32 1.442695, %v1020_v5  ;;  %v800_v8 = vsel %vm635_vm2, %v1600_v6, 0.0 }
 0x361   : > { %801 = vadd.xlane.f32.xlu0 %v800_v8 }
 0x362   : > { %1603 = vpow2.f32 %v1021_v7 }
 0x367   : > { %v1602_v9 = vpop.eup %1601 }
 0x368   : > { %v912_v10 = vsel %vm635_vm2, %v1602_v9, 0.0 }
 0x369   : > { %913 = vadd.xlane.f32.xlu1 %v912_v10 }
 0x36f   : > { %v1604_v11 = vpop.eup %1603 }
 0x370   : > { %v1023_v12 = vsel %vm635_vm2, %v1604_v11, 0.0 }
 0x371   : > { %1024 = vadd.xlane.f32.xlu0 %v1023_v12 }
 0x378   : > { %v690_v13 = vpop.xlane.xlu1 %689 }
 0x379   : > { %1605 = vrcp.f32 %v690_v13 }
 0x37a   : > { %1029 = vrot.lane.b32.xlu1 %v634_v36, %s1892_s19 }
 0x37c   : > { %v808_v15 = vpop.permute.xlu1 %807 }
 0x37d   : > { %v813_v18 = vsel %vm697_vm3, %v808_v15, 0 }
 0x386   : > { %v1606_v14 = vpop.eup %1605 }
 0x387   : > { %918 = vrot.lane.b32.xlu0 %v634_v36, %s1890_s13  ;;  %v692_v16 = vmul.f32 %v1606_v14, %v1598_v59 }
 0x389   : > { %v693_v17 = vpack.c.bf16 %v692_v16, %v692_v16 }
 0x38b   : > { %1435 = vmatmul.mubr.msk.bf16.vlgmr.msra.gmra.mxu0 %vm635_vm2, %v693_v17 }
 0x38c   : > { %1445 = vmatpush3.bf16.msra.mxu0 %v813_v18  ;;  %1446 = vmatprep.mubr.msk.bf16.mxu0 %vm1889_vm0, %v1888_v0 }
 0x38d   : > { %1456 = vmatprep.subr.bf16.mxu0 %v1888_v0 }
 0x3ea   : > { %v802_v19 = vpop.xlane.xlu0 %801 }
 0x3eb   : > { %1607 = vrcp.f32 %v802_v19 }
 0x3f2   : > { %v914_v20 = vpop.xlane.xlu1 %913 }
 0x3f3   : > { %1609 = vrcp.f32 %v914_v20 }
 0x3f6   : > { %v1030_v29 = vpop.permute.xlu1 %1029 }
 0x3f7   : > { %v1035_v31 = vsel %vm697_vm3, %v1030_v29, 0 }
 0x3f8   : > { %v1608_v21 = vpop.eup %1607 }
 0x3f9   : > { %v804_v22 = vmul.f32 %v1608_v21, %v1600_v6 }
 0x3fa   : > { %v1025_v23 = vpop.xlane.xlu0 %1024 }
 0x3fb   : > { %1611 = vrcp.f32 %v1025_v23  ;;  %v805_v24 = vpack.c.bf16 %v804_v22, %v804_v22 }
 0x3fd   : > { %1447 = vmatmul.mubr.msk.bf16.vlgmr.msra.gmra.mxu0 %vm635_vm2, %v805_v24 }
 0x3fe   : > { %v919_v25 = vpop.permute.xlu0 %918  ;;  %1458 = vmatprep.mubr.msk.bf16.mxu0 %vm1889_vm0, %v1888_v0 }
 0x3ff   : > { %v924_v26 = vsel %vm697_vm3, %v919_v25, 0 }
 0x400   : > { %v1610_v27 = vpop.eup %1609  ;;  %1457 = vmatpush3.bf16.msra.mxu0 %v924_v26 }
 0x401   : > { %1468 = vmatprep.subr.bf16.mxu0 %v1888_v0  ;;  %v916_v28 = vmul.f32 %v1610_v27, %v1602_v9 }
 0x403   : > { %v917_v30 = vpack.c.bf16 %v916_v28, %v916_v28 }
 0x405   : > { %1459 = vmatmul.mubr.msk.bf16.vlgmr.msra.gmra.mxu0 %vm635_vm2, %v917_v30 }
 0x406   : > { %1469 = vmatpush3.bf16.msra.mxu0 %v1035_v31  ;;  %1470 = vmatprep.mubr.msk.bf16.mxu0 %vm1889_vm0, %v1888_v0 }
 0x408   : > { %v1612_v32 = vpop.eup %1611 }
 0x409   : > { %v1027_v33 = vmul.f32 %v1612_v32, %v1604_v11 }
 0x40b   : > { %v1028_v34 = vpack.c.bf16 %v1027_v33, %v1027_v33 }
 0x40d   : > { %1471 = vmatmul.mubr.msk.bf16.vlgmr.msra.gmra.mxu0 %vm635_vm2, %v1028_v34 }
 0x44b   : > { %v735_v35 = vpop.f32.mrf.mxu0 }
 0x44c   : > { %v741_v56 = vpack.c.bf16 %v735_v35, %v735_v35 }
 0x44d   : > { %v1436_v36 = vpop.f32.mrf.mxu0 }
 0x44f   : > { %v738_v37 = vpop.f32.mrf.mxu0 }
 0x451   : > { %v1437_v38 = vpop.f32.mrf.mxu0 }
 0x4bd   : > { %v849_v40 = vpop.f32.mrf.mxu0 }
 0x4be   : > { %v855_v42 = vpack.c.bf16 %v849_v40, %v849_v40 }
 0x4bf   : > { %v1448_v43 = vpop.f32.mrf.mxu0 }
 0x4c0   : > { %1079 = vrot.lane.b32.xlu1 %v855_v42, %s1893_s9 }
 0x4c1   : > { %v852_v44 = vpop.f32.mrf.mxu0 }
 0x4c3   : > { %v1449_v45 = vpop.f32.mrf.mxu0 }
 0x4c5   : > { %v960_v46 = vpop.f32.mrf.mxu0 }
 0x4c6   : > { %v966_v47 = vpack.c.bf16 %v960_v46, %v960_v46 }
 0x4c7   : > { %v1460_v48 = vpop.f32.mrf.mxu0 }
 0x4c8   : > { %1082 = vrot.lane.b32.xlu0 %v966_v47, %s1894_s24 }
 0x4c9   : > { %v963_v49 = vpop.f32.mrf.mxu0 }
 0x4cb   : > { %v1461_v50 = vpop.f32.mrf.mxu0 }
 0x4cd   : > { %v1071_v51 = vpop.f32.mrf.mxu0 }
 0x4ce   : > { %v1077_v52 = vpack.c.bf16 %v1071_v51, %v1071_v51 }
 0x4cf   : > { %v1472_v53 = vpop.f32.mrf.mxu0 }
 0x4d0   : > { %1085 = vrot.lane.b32.xlu1 %v1077_v52, %s1895_s26 }
 0x4d1   : > { %v1074_v0 = vpop.f32.mrf.mxu0 }
 0x4d3   : > { %v1473_v54 = vpop.f32.mrf.mxu0 }
 0x532   : > { %v1080_v55 = vpop.permute.xlu1 %1079 }
 0x533   : > { %v1089_v58 = vsel %vm635_vm2, %v741_v56, %v1080_v55 }
 0x53a   : > { %v1083_v57 = vpop.permute.xlu0 %1082 }
 0x53b   : > { %v1092_v59 = vsel %vm1090_vm4, %v1089_v58, %v1083_v57 }
 0x542   : > { %v1086_v60 = vpop.permute.xlu1 %1085 }
 0x543   : > { %v1095_v61 = vsel %vm1093_vm5, %v1092_v59, %v1086_v60 }
 0x544   : > { %1479 = vmatmul.mubr.msk.bf16.vlgmr.msra.gmra.mxu1 %vm470_vm1, %v1095_v61 }
 0x604   : > { %v1155_v63 = vpop.f32.mrf.mxu1 }
 0x605   : > { %v1156_v1 = vadd.f32 %v1366_v62, %v1155_v63 }
 0x606   : > { %v1480_v2 = vpop.f32.mrf.mxu1 }
 0x607   : > { %1161 = vst.msk [vmem:[%s449_s21] sm:$0xff] %vm470_vm1, %v1156_v1 }
 0x608   : > { %v1158_v3 = vpop.f32.mrf.mxu1 }
 0x609   : > { %1814 = shalt.err (!%p1811_p7)
}
 0x60a   : > { %s1815_s3 = scalar_lea.hbm %s2271_s23, 128  ;;  %s1819_s10 = scalar_lea.hbm %s2323_s8, 256 }
 0x60b   : > { %p1816_p3 = scmp.ne.s32.totalorder %s2271_s23, %s1815_s3  ;;  %p1820_p6 = scmp.lt.s32.totalorder %s2271_s23, %s2323_s8 }
 0x60c   : > { %p1821_p9 = scmp.lt.s32.totalorder %s1819_s10, %s1815_s3 }
 0x60d   : > { %p1817_p12 = pnand %p1816_p3, %p2374_p1 }
 0x60e   : > { %p1822_p2 = por %p1821_p9, %p1820_p6 }
 0x60f   : > { %p1818_p13 = pneg %p1817_p12 }
 0x611   : > { %p1823_p5 = pnand %p1822_p2, %p1818_p13 }
 0x613   : > { %1826 = shalt.err (!%p1823_p5)
}
 0x614   : > { %1504 = dma.vmem_to_hbm [thread:$0]  (%p2374_p1), %s2273_s14, 128, %s2271_s23, %s1163_s1   ;;  %v1481_v4 = vpop.f32.mrf.mxu1 }
 0x615 PF: > { %s2375_s24 = sld [smem:[#allocation23_spill]]  ;;  %s1188_s30 = sand.u32 1, %s1865_s27  }
 0x616   : > { %s2376_s26 = sld [smem:[#allocation20_spill]]  ;;  %s1189_s15 = scalar_lea.sflag [#allocation4], %s1188_s30 }
 0x61b   : > { %p2377_p8 = scmp.ne.s32.totalorder %s2375_s24, 0 }
 0x61c   : > { %p2378_p10 = scmp.ge.s32.totalorder %s2376_s26, 2 }
 0x61e   : > { %p1530_p11 = pnand %p2378_p10, %p2377_p8 }
 0x620   : > { %p1531_p0 = pneg %p1530_p11 }
 0x622   : > { %1860 = dma.done.wait (%p1531_p0), %s1189_s15, 128  }
 0x623   : > { %1862 = vsyncadd (%p1531_p0), %s1189_s15, 4294967168  ;;  %s2379_s30 = sld [smem:[#allocation21_spill]]  ;;  %s2381_s27 = smov %s1869_s28 }
 0x624   : > { %s2380_s16 = sld [smem:[#allocation22_spill]]  ;;  %s2382_s28 = smov %s1873_s29 }
 0x629   : > { %p26_p4 = scmp.ge.s32.totalorder %s2379_s30, 4  }
 0x62a   : > { %s2383_s29 = smov %s2380_s16 }
 0x62b   :  { %28 = sbr.rel (!%p26_p4) target bundleno = 14 (0xe), region = 137 }
 0x630   :  { %1194 = vsyncpa [#allocation3], 1 }
 0x631   :  { %1196 = vsyncpa [#allocation3 + $0x1], 1 }
 0x632   :  { %1197 = vsyncpa [#allocation6], 1 }
 0x633   :  { %1199 = vsyncpa [#allocation6 + $0x1], 1 }
 0x634   :  { %1200 = vsyncpa [#allocation9], 1 }
 0x635   :  { %1201 = vsyncpa [#allocation12], 1 }
 0x636   :  { %1202 = vsyncpa [#allocation4], 1 }
 0x637   :  { %1204 = vsyncpa [#allocation4 + $0x1], 1 }

</bundles_post_ra>
